<compile_context>
chip_gen: v6e
topology: v6e:2x2x1
jax: 0.10.0
libtpu: 0.0.40
codegen_flags: <defaults>
</compile_context>

<pallas_src>
import jax
import jax.numpy as jnp
import numpy as np
from jax import lax
from jax.experimental import pallas as pl
from jax.experimental.pallas import tpu as pltpu

N, H, W = 2, 16, 16
CIN = COUT = 8           # inplanes == planes
NH = N * H               # 32  sublane (row) extent of the activation slab
LC = W * CIN             # 128 lane extent of the activation slab
NHW = N * H * W          # 512 elements per channel (BN population)
EPS = 1e-5


def basic_block_kernel(x_ref, w_ref, bn_ref, o_ref):
    x = x_ref[...]                                   # (NH, LC) f32

    # ---- hoisted once, reused by both convs -------------------------------
    # Row-validity masks for the ky = -1 / +1 taps (image-top / image-bottom).
    # Kept in bf16 so the masking multiply acts on the packed bf16 operands.
    h = lax.broadcasted_iota(jnp.int32, (NH, 1), 0) % H
    mask_up = (h >= 1).astype(jnp.bfloat16)          # source row h-1 exists
    mask_dn = (h <= H - 2).astype(jnp.bfloat16)      # source row h+1 exists

    bnv = bn_ref[...]                                # (8, LC) f32
    g1, b1 = bnv[0:1, :], bnv[1:2, :]
    g2, b2 = bnv[2:3, :], bnv[3:4, :]

    def conv3x3(a_f32, w_k):
        # Single fused MXU matmul: ky taps via +/-1 sublane roll (wrapped rows
        # masked — safe because h==0 / h==H-1 coincide with image boundaries),
        # lane-concat [up | ct | dn] -> (NH, 3*LC) bf16, one dot against the
        # stacked block-banded weight (3*LC, LC).
        ct = a_f32.astype(jnp.bfloat16)
        up = pltpu.roll(a_f32, 1, axis=0).astype(jnp.bfloat16) * mask_up
        dn = pltpu.roll(a_f32, NH - 1, axis=0).astype(jnp.bfloat16) * mask_dn
        stacked = jnp.concatenate([up, ct, dn], axis=-1)     # (NH, 3*LC)
        return jnp.dot(stacked, w_k, preferred_element_type=jnp.float32)

    def batchnorm(a, gamma, beta):
        # Training-mode batch stats.  Sublane reduce first, then a lane-strided
        # butterfly (stride = C) folds the W lane-groups of each channel and
        # broadcasts the per-channel totals back to every lane — all XLU/VPU,
        # no MXU, no proj matrix, everything f32.
        s1 = jnp.sum(a, axis=0, keepdims=True)               # (1, LC)
        s2 = jnp.sum(a * a, axis=0, keepdims=True)           # (1, LC)
        for shift in (CIN, 2 * CIN, 4 * CIN, 8 * CIN):       # 8, 16, 32, 64
            s1 = s1 + pltpu.roll(s1, shift, axis=1)
            s2 = s2 + pltpu.roll(s2, shift, axis=1)
        mean = s1 * (1.0 / NHW)
        var = jnp.maximum(s2 * (1.0 / NHW) - mean * mean, 0.0)
        return (a - mean) * lax.rsqrt(var + EPS) * gamma + beta

    out = conv3x3(x, w_ref[0])                                # conv1
    out = jnp.maximum(batchnorm(out, g1, b1), 0.0)            # bn1 + relu
    out = conv3x3(out, w_ref[1])                              # conv2
    out = batchnorm(out, g2, b2)                              # bn2
    out = out + x                                             # identity (downsample=None)
    o_ref[...] = jnp.maximum(out, 0.0)                        # relu
    # TODO(synk): BatchNorm running-stat updates (training side effect) are not
    # materialized; only the forward output is produced.


def _pack_banded(w_oihw, cin, cout):
    """PyTorch conv weight (O, I, 3, 3) -> (3*W*I, W*O) stacked block-banded.

    Row block ky in {0,1,2} pairs with the [up | ct | dn] lane-concat order.
    mats[ky][w_in*I + ci, w_out*O + co] = w[co, ci, ky, kx] for
    kx = (w_in - w_out) + 1 in {0,1,2}; out-of-range kx bands are zero, which
    encodes the kx zero-padding for free.
    """
    wi = jnp.arange(W)[:, None]           # input column index
    wo = jnp.arange(W)[None, :]           # output column index
    mats = []
    for ky in range(3):
        bmat = jnp.zeros((W * cin, W * cout), jnp.float32)
        for kx in range(3):
            dx = kx - 1
            band = (wi == wo + dx).astype(jnp.float32)              # (W, W)
            tap = jnp.transpose(w_oihw[:, :, ky, kx])               # (I, O)
            bmat = bmat + jnp.kron(band, tap)
        mats.append(bmat)
    return jnp.concatenate(mats, axis=0)                            # (3*W*I, W*O)


def basic_block(x_nchw, w1, g1, b1, w2, g2, b2):
    n, c, h, w = x_nchw.shape
    assert (n, c, h, w) == (N, CIN, H, W)

    # NCHW -> (N*H, W*C) channels-last slab: row = n*H + h, lane = w*C + ci.
    x2 = jnp.transpose(x_nchw, (0, 2, 3, 1)).reshape(NH, LC).astype(jnp.float32)

    # Host-side packing into the final kernel layouts (free at trace time).
    wpk = jnp.stack([_pack_banded(w1, CIN, COUT),
                     _pack_banded(w2, COUT, COUT)]).astype(jnp.bfloat16)  # (2,384,128)
    bnpk = jnp.zeros((8, LC), jnp.float32)
    bnpk = bnpk.at[0].set(jnp.tile(g1.astype(jnp.float32), W))
    bnpk = bnpk.at[1].set(jnp.tile(b1.astype(jnp.float32), W))
    bnpk = bnpk.at[2].set(jnp.tile(g2.astype(jnp.float32), W))
    bnpk = bnpk.at[3].set(jnp.tile(b2.astype(jnp.float32), W))

    vmem = pl.BlockSpec(memory_space=pltpu.MemorySpace.VMEM)
    out2 = pl.pallas_call(
        basic_block_kernel,
        out_shape=jax.ShapeDtypeStruct((NH, LC), jnp.float32),
        in_specs=[vmem, vmem, vmem],
        out_specs=vmem,
        cost_estimate=pl.CostEstimate(
            flops=2 * (2 * NH * (3 * LC) * LC),          # two fused conv matmuls
            transcendentals=2 * LC,                      # two rsqrt rows
            bytes_accessed=(2 * NH * LC * 4              # x in + out
                            + 2 * 3 * LC * LC * 2        # bf16 weight slab
                            + 8 * LC * 4)),              # bn slab
    )(x2, wpk, bnpk)

    return jnp.transpose(out2.reshape(n, h, w, COUT), (0, 3, 1, 2))


def ref_basic_block(x, w1, g1, b1, w2, g2, b2):
    """Pure-JAX reference (NCHW) mirroring the PyTorch forward."""
    def conv(a, wgt):
        return lax.conv_general_dilated(
            a, wgt, window_strides=(1, 1), padding=((1, 1), (1, 1)),
            dimension_numbers=('NCHW', 'OIHW', 'NCHW'),
            precision=lax.Precision.HIGHEST)

    def bn(a, g, b):
        mean = jnp.mean(a, axis=(0, 2, 3), keepdims=True)
        var = jnp.mean((a - mean) ** 2, axis=(0, 2, 3), keepdims=True)
        return ((a - mean) * lax.rsqrt(var + EPS)
                * g.reshape(1, -1, 1, 1) + b.reshape(1, -1, 1, 1))

    out = jnp.maximum(bn(conv(x, w1), g1, b1), 0.0)
    out = bn(conv(out, w2), g2, b2)
    return jnp.maximum(out + x, 0.0)


if __name__ == "__main__":
    key = jax.random.PRNGKey(0)
    ks = jax.random.split(key, 7)
    x = jax.random.normal(ks[0], (N, CIN, H, W), jnp.float32)
    w1 = 0.1 * jax.random.normal(ks[1], (COUT, CIN, 3, 3), jnp.float32)
    w2 = 0.1 * jax.random.normal(ks[2], (COUT, COUT, 3, 3), jnp.float32)
    g1 = 1.0 + 0.1 * jax.random.normal(ks[3], (COUT,), jnp.float32)
    b1 = 0.1 * jax.random.normal(ks[4], (COUT,), jnp.float32)
    g2 = 1.0 + 0.1 * jax.random.normal(ks[5], (COUT,), jnp.float32)
    b2 = 0.1 * jax.random.normal(ks[6], (COUT,), jnp.float32)

    out = jax.jit(basic_block)(x, w1, g1, b1, w2, g2, b2)
    out = jax.block_until_ready(out)

    ref = ref_basic_block(x, w1, g1, b1, w2, g2, b2)
    # Tolerance reflects bf16 MXU operands (f32 accumulation) through two
    # conv+BN stages vs an f32 HIGHEST-precision reference.
    np.testing.assert_allclose(np.asarray(out), np.asarray(ref),
                               atol=2e-2, rtol=2e-2)
    print("KERNEL_OK")
</pallas_src>

<mosaic_0001>
module attributes {stable_mosaic.version = 11 : i64} {
  func.func @basic_block_kernel(%arg0: memref<32x128xf32, #tpu.memory_space<vmem>>, %arg1: memref<2x384x128xbf16, #tpu.memory_space<vmem>>, %arg2: memref<8x128xf32, #tpu.memory_space<vmem>>, %arg3: memref<32x128xf32, #tpu.memory_space<vmem>>) attributes {dimension_semantics = [], scalar_prefetch = 0 : i64, scratch_operands = 0 : i64, tpu.core_type = #tpu.core_type<tc>} {
    %c0 = arith.constant 0 : index
    %c0_0 = arith.constant 0 : index
    %0 = vector.load %arg0[%c0, %c0_0] : memref<32x128xf32, #tpu.memory_space<vmem>>, vector<32x128xf32>
    %1 = tpu.iota {dimensions = array<i32: 0>} : vector<32x1xi32>
    %c16_i32 = arith.constant 16 : i32
    %c0_i32 = arith.constant 0 : i32
    %2 = arith.cmpi eq, %c16_i32, %c0_i32 : i32
    %c1_i32 = arith.constant 1 : i32
    %3 = arith.select %2, %c1_i32, %c16_i32 : i32
    %4 = vector.broadcast %3 : i32 to vector<32x1xi32>
    %5 = arith.remsi %1, %4 : vector<32x1xi32>
    %c0_i32_1 = arith.constant 0 : i32
    %6 = vector.broadcast %c0_i32_1 : i32 to vector<32x1xi32>
    %7 = arith.cmpi ne, %5, %6 : vector<32x1xi32>
    %c0_i32_2 = arith.constant 0 : i32
    %8 = vector.broadcast %c0_i32_2 : i32 to vector<32x1xi32>
    %9 = arith.cmpi slt, %5, %8 : vector<32x1xi32>
    %c0_i32_3 = arith.constant 0 : i32
    %10 = arith.cmpi slt, %3, %c0_i32_3 : i32
    %11 = vector.broadcast %10 : i1 to vector<32x1xi1>
    %12 = vector.broadcast %11 : vector<32x1xi1> to vector<32x1xi1>
    %13 = arith.xori %9, %12 : vector<32x1xi1>
    %14 = arith.andi %13, %7 : vector<32x1xi1>
    %15 = vector.broadcast %3 : i32 to vector<32x1xi32>
    %16 = arith.addi %5, %15 : vector<32x1xi32>
    %17 = arith.select %14, %16, %5 : vector<32x1xi1>, vector<32x1xi32>
    %c1_i32_4 = arith.constant 1 : i32
    %18 = vector.broadcast %c1_i32_4 : i32 to vector<32x1xi32>
    %19 = arith.cmpi sge, %17, %18 : vector<32x1xi32>
    %20 = arith.extui %19 : vector<32x1xi1> to vector<32x1xi32>
    %21 = arith.sitofp %20 : vector<32x1xi32> to vector<32x1xf32>
    %22 = arith.truncf %21 : vector<32x1xf32> to vector<32x1xbf16>
    %c14_i32 = arith.constant 14 : i32
    %23 = vector.broadcast %c14_i32 : i32 to vector<32x1xi32>
    %24 = arith.cmpi sle, %17, %23 : vector<32x1xi32>
    %25 = arith.extui %24 : vector<32x1xi1> to vector<32x1xi32>
    %26 = arith.sitofp %25 : vector<32x1xi32> to vector<32x1xf32>
    %27 = arith.truncf %26 : vector<32x1xf32> to vector<32x1xbf16>
    %c0_5 = arith.constant 0 : index
    %c0_6 = arith.constant 0 : index
    %28 = vector.load %arg2[%c0_5, %c0_6] : memref<8x128xf32, #tpu.memory_space<vmem>>, vector<8x128xf32>
    %29 = vector.extract_strided_slice %28 {offsets = [0, 0], sizes = [1, 128], strides = [1, 1]} : vector<8x128xf32> to vector<1x128xf32>
    %30 = vector.extract_strided_slice %28 {offsets = [1, 0], sizes = [1, 128], strides = [1, 1]} : vector<8x128xf32> to vector<1x128xf32>
    %31 = vector.extract_strided_slice %28 {offsets = [2, 0], sizes = [1, 128], strides = [1, 1]} : vector<8x128xf32> to vector<1x128xf32>
    %32 = vector.extract_strided_slice %28 {offsets = [3, 0], sizes = [1, 128], strides = [1, 1]} : vector<8x128xf32> to vector<1x128xf32>
    %c0_7 = arith.constant 0 : index
    %c0_8 = arith.constant 0 : index
    %c0_9 = arith.constant 0 : index
    %33 = vector.load %arg1[%c0_7, %c0_8, %c0_9] : memref<2x384x128xbf16, #tpu.memory_space<vmem>>, vector<1x384x128xbf16>
    %34 = vector.shape_cast %33 : vector<1x384x128xbf16> to vector<384x128xbf16>
    %35 = arith.truncf %0 : vector<32x128xf32> to vector<32x128xbf16>
    %c1_i32_10 = arith.constant 1 : i32
    %36 = tpu.dynamic_rotate %0 by %c1_i32_10 dim 0 : vector<32x128xf32>, i32 -> vector<32x128xf32>
    %37 = arith.truncf %36 : vector<32x128xf32> to vector<32x128xbf16>
    %38 = vector.broadcast %22 : vector<32x1xbf16> to vector<32x128xbf16>
    %39 = arith.mulf %37, %38 : vector<32x128xbf16>
    %c31_i32 = arith.constant 31 : i32
    %40 = tpu.dynamic_rotate %0 by %c31_i32 dim 0 : vector<32x128xf32>, i32 -> vector<32x128xf32>
    %41 = arith.truncf %40 : vector<32x128xf32> to vector<32x128xbf16>
    %42 = vector.broadcast %27 : vector<32x1xbf16> to vector<32x128xbf16>
    %43 = arith.mulf %41, %42 : vector<32x128xbf16>
    %44 = tpu.concatenate %39, %35, %43 in 1 : vector<32x128xbf16>, vector<32x128xbf16>, vector<32x128xbf16> -> vector<32x384xbf16>
    %cst = arith.constant dense<0.000000e+00> : vector<32x128xf32>
    %45 = tpu.matmul %44, %34, %cst {dimension_numbers = #tpu.dot_dimension_numbers<[1], [0], [0], [1], [0, 0, 1, 1], [], []>} : vector<32x384xbf16>, vector<384x128xbf16>, vector<32x128xf32> -> vector<32x128xf32>
    %cst_11 = arith.constant dense<0.000000e+00> : vector<128xf32>
    %46 = vector.multi_reduction <add>, %45, %cst_11 [0] : vector<32x128xf32> to vector<128xf32>
    %47 = vector.shape_cast %46 : vector<128xf32> to vector<1x128xf32>
    %48 = arith.mulf %45, %45 : vector<32x128xf32>
    %cst_12 = arith.constant dense<0.000000e+00> : vector<128xf32>
    %49 = vector.multi_reduction <add>, %48, %cst_12 [0] : vector<32x128xf32> to vector<128xf32>
    %50 = vector.shape_cast %49 : vector<128xf32> to vector<1x128xf32>
    %c8_i32 = arith.constant 8 : i32
    %51 = tpu.dynamic_rotate %47 by %c8_i32 dim 1 : vector<1x128xf32>, i32 -> vector<1x128xf32>
    %52 = arith.addf %47, %51 : vector<1x128xf32>
    %c8_i32_13 = arith.constant 8 : i32
    %53 = tpu.dynamic_rotate %50 by %c8_i32_13 dim 1 : vector<1x128xf32>, i32 -> vector<1x128xf32>
    %54 = arith.addf %50, %53 : vector<1x128xf32>
    %c16_i32_14 = arith.constant 16 : i32
    %55 = tpu.dynamic_rotate %52 by %c16_i32_14 dim 1 : vector<1x128xf32>, i32 -> vector<1x128xf32>
    %56 = arith.addf %52, %55 : vector<1x128xf32>
    %c16_i32_15 = arith.constant 16 : i32
    %57 = tpu.dynamic_rotate %54 by %c16_i32_15 dim 1 : vector<1x128xf32>, i32 -> vector<1x128xf32>
    %58 = arith.addf %54, %57 : vector<1x128xf32>
    %c32_i32 = arith.constant 32 : i32
    %59 = tpu.dynamic_rotate %56 by %c32_i32 dim 1 : vector<1x128xf32>, i32 -> vector<1x128xf32>
    %60 = arith.addf %56, %59 : vector<1x128xf32>
    %c32_i32_16 = arith.constant 32 : i32
    %61 = tpu.dynamic_rotate %58 by %c32_i32_16 dim 1 : vector<1x128xf32>, i32 -> vector<1x128xf32>
    %62 = arith.addf %58, %61 : vector<1x128xf32>
    %c64_i32 = arith.constant 64 : i32
    %63 = tpu.dynamic_rotate %60 by %c64_i32 dim 1 : vector<1x128xf32>, i32 -> vector<1x128xf32>
    %64 = arith.addf %60, %63 : vector<1x128xf32>
    %c64_i32_17 = arith.constant 64 : i32
    %65 = tpu.dynamic_rotate %62 by %c64_i32_17 dim 1 : vector<1x128xf32>, i32 -> vector<1x128xf32>
    %66 = arith.addf %62, %65 : vector<1x128xf32>
    %cst_18 = arith.constant 0.001953125 : f32
    %67 = vector.broadcast %cst_18 : f32 to vector<1x128xf32>
    %68 = arith.mulf %64, %67 : vector<1x128xf32>
    %cst_19 = arith.constant 0.001953125 : f32
    %69 = vector.broadcast %cst_19 : f32 to vector<1x128xf32>
    %70 = arith.mulf %66, %69 : vector<1x128xf32>
    %71 = arith.mulf %68, %68 : vector<1x128xf32>
    %72 = arith.subf %70, %71 : vector<1x128xf32>
    %cst_20 = arith.constant 0.000000e+00 : f32
    %73 = vector.broadcast %cst_20 : f32 to vector<1x128xf32>
    %74 = arith.maximumf %72, %73 : vector<1x128xf32>
    %75 = vector.broadcast %68 : vector<1x128xf32> to vector<32x128xf32>
    %76 = arith.subf %45, %75 : vector<32x128xf32>
    %cst_21 = arith.constant 9.99999974E-6 : f32
    %77 = vector.broadcast %cst_21 : f32 to vector<1x128xf32>
    %78 = arith.addf %74, %77 : vector<1x128xf32>
    %79 = math.rsqrt %78 : vector<1x128xf32>
    %80 = vector.broadcast %79 : vector<1x128xf32> to vector<32x128xf32>
    %81 = arith.mulf %76, %80 : vector<32x128xf32>
    %82 = vector.broadcast %29 : vector<1x128xf32> to vector<32x128xf32>
    %83 = arith.mulf %81, %82 : vector<32x128xf32>
    %84 = vector.broadcast %30 : vector<1x128xf32> to vector<32x128xf32>
    %85 = arith.addf %83, %84 : vector<32x128xf32>
    %cst_22 = arith.constant 0.000000e+00 : f32
    %86 = vector.broadcast %cst_22 : f32 to vector<32x128xf32>
    %87 = arith.maximumf %85, %86 : vector<32x128xf32>
    %c1 = arith.constant 1 : index
    %c0_23 = arith.constant 0 : index
    %c0_24 = arith.constant 0 : index
    %88 = vector.load %arg1[%c1, %c0_23, %c0_24] : memref<2x384x128xbf16, #tpu.memory_space<vmem>>, vector<1x384x128xbf16>
    %89 = vector.shape_cast %88 : vector<1x384x128xbf16> to vector<384x128xbf16>
    %90 = arith.truncf %87 : vector<32x128xf32> to vector<32x128xbf16>
    %c1_i32_25 = arith.constant 1 : i32
    %91 = tpu.dynamic_rotate %87 by %c1_i32_25 dim 0 : vector<32x128xf32>, i32 -> vector<32x128xf32>
    %92 = arith.truncf %91 : vector<32x128xf32> to vector<32x128xbf16>
    %93 = vector.broadcast %22 : vector<32x1xbf16> to vector<32x128xbf16>
    %94 = arith.mulf %92, %93 : vector<32x128xbf16>
    %c31_i32_26 = arith.constant 31 : i32
    %95 = tpu.dynamic_rotate %87 by %c31_i32_26 dim 0 : vector<32x128xf32>, i32 -> vector<32x128xf32>
    %96 = arith.truncf %95 : vector<32x128xf32> to vector<32x128xbf16>
    %97 = vector.broadcast %27 : vector<32x1xbf16> to vector<32x128xbf16>
    %98 = arith.mulf %96, %97 : vector<32x128xbf16>
    %99 = tpu.concatenate %94, %90, %98 in 1 : vector<32x128xbf16>, vector<32x128xbf16>, vector<32x128xbf16> -> vector<32x384xbf16>
    %cst_27 = arith.constant dense<0.000000e+00> : vector<32x128xf32>
    %100 = tpu.matmul %99, %89, %cst_27 {dimension_numbers = #tpu.dot_dimension_numbers<[1], [0], [0], [1], [0, 0, 1, 1], [], []>} : vector<32x384xbf16>, vector<384x128xbf16>, vector<32x128xf32> -> vector<32x128xf32>
    %cst_28 = arith.constant dense<0.000000e+00> : vector<128xf32>
    %101 = vector.multi_reduction <add>, %100, %cst_28 [0] : vector<32x128xf32> to vector<128xf32>
    %102 = vector.shape_cast %101 : vector<128xf32> to vector<1x128xf32>
    %103 = arith.mulf %100, %100 : vector<32x128xf32>
    %cst_29 = arith.constant dense<0.000000e+00> : vector<128xf32>
    %104 = vector.multi_reduction <add>, %103, %cst_29 [0] : vector<32x128xf32> to vector<128xf32>
    %105 = vector.shape_cast %104 : vector<128xf32> to vector<1x128xf32>
    %c8_i32_30 = arith.constant 8 : i32
    %106 = tpu.dynamic_rotate %102 by %c8_i32_30 dim 1 : vector<1x128xf32>, i32 -> vector<1x128xf32>
    %107 = arith.addf %102, %106 : vector<1x128xf32>
    %c8_i32_31 = arith.constant 8 : i32
    %108 = tpu.dynamic_rotate %105 by %c8_i32_31 dim 1 : vector<1x128xf32>, i32 -> vector<1x128xf32>
    %109 = arith.addf %105, %108 : vector<1x128xf32>
    %c16_i32_32 = arith.constant 16 : i32
    %110 = tpu.dynamic_rotate %107 by %c16_i32_32 dim 1 : vector<1x128xf32>, i32 -> vector<1x128xf32>
    %111 = arith.addf %107, %110 : vector<1x128xf32>
    %c16_i32_33 = arith.constant 16 : i32
    %112 = tpu.dynamic_rotate %109 by %c16_i32_33 dim 1 : vector<1x128xf32>, i32 -> vector<1x128xf32>
    %113 = arith.addf %109, %112 : vector<1x128xf32>
    %c32_i32_34 = arith.constant 32 : i32
    %114 = tpu.dynamic_rotate %111 by %c32_i32_34 dim 1 : vector<1x128xf32>, i32 -> vector<1x128xf32>
    %115 = arith.addf %111, %114 : vector<1x128xf32>
    %c32_i32_35 = arith.constant 32 : i32
    %116 = tpu.dynamic_rotate %113 by %c32_i32_35 dim 1 : vector<1x128xf32>, i32 -> vector<1x128xf32>
    %117 = arith.addf %113, %116 : vector<1x128xf32>
    %c64_i32_36 = arith.constant 64 : i32
    %118 = tpu.dynamic_rotate %115 by %c64_i32_36 dim 1 : vector<1x128xf32>, i32 -> vector<1x128xf32>
    %119 = arith.addf %115, %118 : vector<1x128xf32>
    %c64_i32_37 = arith.constant 64 : i32
    %120 = tpu.dynamic_rotate %117 by %c64_i32_37 dim 1 : vector<1x128xf32>, i32 -> vector<1x128xf32>
    %121 = arith.addf %117, %120 : vector<1x128xf32>
    %cst_38 = arith.constant 0.001953125 : f32
    %122 = vector.broadcast %cst_38 : f32 to vector<1x128xf32>
    %123 = arith.mulf %119, %122 : vector<1x128xf32>
    %cst_39 = arith.constant 0.001953125 : f32
    %124 = vector.broadcast %cst_39 : f32 to vector<1x128xf32>
    %125 = arith.mulf %121, %124 : vector<1x128xf32>
    %126 = arith.mulf %123, %123 : vector<1x128xf32>
    %127 = arith.subf %125, %126 : vector<1x128xf32>
    %cst_40 = arith.constant 0.000000e+00 : f32
    %128 = vector.broadcast %cst_40 : f32 to vector<1x128xf32>
    %129 = arith.maximumf %127, %128 : vector<1x128xf32>
    %130 = vector.broadcast %123 : vector<1x128xf32> to vector<32x128xf32>
    %131 = arith.subf %100, %130 : vector<32x128xf32>
    %cst_41 = arith.constant 9.99999974E-6 : f32
    %132 = vector.broadcast %cst_41 : f32 to vector<1x128xf32>
    %133 = arith.addf %129, %132 : vector<1x128xf32>
    %134 = math.rsqrt %133 : vector<1x128xf32>
    %135 = vector.broadcast %134 : vector<1x128xf32> to vector<32x128xf32>
    %136 = arith.mulf %131, %135 : vector<32x128xf32>
    %137 = vector.broadcast %31 : vector<1x128xf32> to vector<32x128xf32>
    %138 = arith.mulf %136, %137 : vector<32x128xf32>
    %139 = vector.broadcast %32 : vector<1x128xf32> to vector<32x128xf32>
    %140 = arith.addf %138, %139 : vector<32x128xf32>
    %141 = arith.addf %140, %0 : vector<32x128xf32>
    %cst_42 = arith.constant 0.000000e+00 : f32
    %142 = vector.broadcast %cst_42 : f32 to vector<32x128xf32>
    %143 = arith.maximumf %141, %142 : vector<32x128xf32>
    %c0_43 = arith.constant 0 : index
    %c0_44 = arith.constant 0 : index
    %144 = vector.load %arg3[%c0_43, %c0_44] : memref<32x128xf32, #tpu.memory_space<vmem>>, vector<32x128xf32>
    tpu.vector_store %arg3[%c0_43, %c0_44], %143 {strides = array<i32>} : memref<32x128xf32, #tpu.memory_space<vmem>>, vector<32x128xf32>,
    return
  }
}

</mosaic_0001>

<bundles_post_ra>
// kernel: tile.23
= control target key start
LH: loop header
LB: loop body
LE: loop exit
PB: predicated region body
PF: predicated region fallthrough
CT: control target
= control target key end

     0   :  { %s28_s0 = inlined_call_operand.vmem [shape: f32[8], index: 0, kind: input, shape index: {}]   ;;  %s29_s1 = inlined_call_operand.vmem [shape: f32[16,8], index: 1, kind: output, shape index: {}]  }
   0x1   :  { %v4_v0 = vld [vmem:[%s28_s0] ss:$0 sm:$0xff] }
   0x2   :  { %5 = vst [vmem:[%s29_s1] sm:$0xff] %v4_v0  ;;  %8 = vst [vmem:[%s29_s1 + $0x8] sm:$0xff] %v4_v0 }

// kernel: basic_block.1
= control target key start
LH: loop header
LB: loop body
LE: loop exit
PB: predicated region body
PF: predicated region fallthrough
CT: control target
= control target key end

     0   :  { %v19_v0 = vlaneseq  ;;  %v1200_v26 = vmov 0.0   ;;  %v1201_v39 = vmov 1.0   ;;  %s1203_s14 = smov 16   ;;  %s1204_s15 = smov 32   ;;  %s1568_s1 = inlined_call_operand.vmem [shape: bf16[2,384,128], index: 1, kind: input, shape index: {}]   ;;  %s1569_s0 = inlined_call_operand.vmem [shape: f32[32,128], index: 0, kind: input, shape index: {}]   ;;  %s1570_s2 = inlined_call_operand.vmem [shape: f32[8,128], index: 2, kind: input, shape index: {}]   ;;  %s1571_s3 = inlined_call_operand.vmem [shape: f32[32,128], index: 3, kind: output, shape index: {}]  }
   0x1   :  { %v1148_v1 = vld [vmem:[%s1568_s1 + $0x78] sm:$0xff]   ;;  %v1151_v4 = vld [vmem:[%s1568_s1 + $0x70] sm:$0xff]   ;;  %v1154_v8 = vld [vmem:[%s1568_s1 + $0x68] sm:$0xff]   ;;  %s1205_s18 = smov 64  }
   0x2   :  { %v1149_v2 = vld [vmem:[%s1568_s1 + $0xb8] sm:$0xff]   ;;  %1026 = vmatprep.subr.bf16.mxu0 %v1148_v1  ;;  %v1238_v5 = vshrl.u32 %v19_v0, 7  ;;  %v1152_v6 = vld [vmem:[%s1568_s1 + $0xb0] sm:$0xff]   ;;  %v1155_v9 = vld [vmem:[%s1568_s1 + $0xa8] sm:$0xff]  }
   0x3   :  { %v1150_v3 = vld [vmem:[%s1568_s1 + $0x38] sm:$0xff]   ;;  %1102 = vmatprep.subr.bf16.mxu1 %v1149_v2  ;;  %v1153_v7 = vld [vmem:[%s1568_s1 + $0x30] sm:$0xff]   ;;  %v1156_v11 = vld [vmem:[%s1568_s1 + $0x28] sm:$0xff]  }
   0x4   :  { %1027 = vmatpush3.bf16.msra.mxu0 %v1150_v3  ;;  %1103 = vmatpush3.bf16.msra.mxu1 %v1149_v2  ;;  %v21_v10 = vadd.s32 8, %v1238_v5  ;;  %v1157_v12 = vld [vmem:[%s1568_s1 + $0x60] sm:$0xff]   ;;  %v1160_v16 = vld [vmem:[%s1568_s1 + $0x58] sm:$0xff]   ;;  %v23_v17 = vadd.s32 24, %v1238_v5  ;;  %v22_v19 = vadd.s32 16, %v1238_v5  ;;  %v28_v20 = vand.u32 15, %v1238_v5 }
   0x5   :  { %1028 = vmatprep.subr.bf16.mxu0 %v1151_v4  ;;  %1104 = vmatprep.subr.bf16.mxu1 %v1152_v6  ;;  %v1158_v13 = vld [vmem:[%s1568_s1 + $0xa0] sm:$0xff]   ;;  %v1161_v18 = vld [vmem:[%s1568_s1 + $0x98] sm:$0xff]   ;;  %v1163_v22 = vld [vmem:[%s1568_s1 + $0x50] sm:$0xff]   ;;  %vm168_vm4 = vcmp.lt.s32.totalorder %v1238_v5, 7  ;;  %vm155_vm5 = vcmp.lt.s32.totalorder %v1238_v5, 1 }
   0x6   :  { %v1159_v14 = vld [vmem:[%s1568_s1 + $0x20] sm:$0xff]   ;;  %v35_v15 = vand.u32 15, %v21_v10  ;;  %v1162_v21 = vld [vmem:[%s1568_s1 + $0x18] sm:$0xff]   ;;  %v49_v23 = vand.u32 15, %v23_v17  ;;  %v1164_v24 = vld [vmem:[%s1568_s1 + $0x90] sm:$0xff]   ;;  %v42_v25 = vand.u32 15, %v22_v19 }
   0x7   :  { %v1165_v28 = vld [vmem:[%s1568_s1 + $0x10] sm:$0xff]   ;;  %vm72_vm1 = vcmp.ge.s32.totalorder %v28_v20, 1  ;;  %v1166_v29 = vld [vmem:[%s1568_s1 + $0x48] sm:$0xff]   ;;  %v1169_v33 = vld [vmem:[%s1568_s1 + $0x40] sm:$0xff]  }
   0x8   :  { %1029 = vmatpush3.bf16.msra.mxu0 %v1153_v7  ;;  %1105 = vmatpush3.bf16.msra.mxu1 %v1152_v6  ;;  %vm87_vm0 = vcmp.le.s32.totalorder %v35_v15, 14  ;;  %vm1289_vm2 = vcmp.le.s32.totalorder %v49_v23, 14  ;;  %v1167_v31 = vld [vmem:[%s1568_s1 + $0x88] sm:$0xff]   ;;  %vm74_vm3 = vcmp.ge.s32.totalorder %v42_v25, 1  ;;  %v1170_v34 = vld [vmem:[%s1568_s1 + $0x80] sm:$0xff]   ;;  %v926_v35 = vsel %vm72_vm1, 1.0, %v1200_v26 }
   0x9   :  { %1030 = vmatprep.subr.bf16.mxu0 %v1154_v8  ;;  %1106 = vmatprep.subr.bf16.mxu1 %v1155_v9  ;;  %v928_v27 = vsel %vm87_vm0, 1.0, %v1200_v26  ;;  %v1168_v32 = vld [vmem:[%s1568_s1 + $0x8] sm:$0xff]   ;;  %v1309_v36 = vld [vmem:[%s1569_s0] sm:$0xff]  ;;  %v1319_v38 = vld [vmem:[%s1569_s0 + $0x18] sm:$0xff]  ;;  %v929_v41 = vsel %vm1289_vm2, 1.0, %v1200_v26  ;;  %v927_v42 = vsel %vm74_vm3, 1.0, %v1200_v26  ;;  %v1343_v53 = vpack.c.bf16 %v1201_v39, %v926_v35 }
   0xa   :  { %v1314_v37 = vld [vmem:[%s1569_s0 + $0x8] sm:$0xff]  ;;  %v1321_v40 = vpack.c.bf16 %v928_v27, %v1201_v39  ;;  %v151_v44 = vrot.slane %v1309_v36, 7  ;;  %v1333_v46 = vld [vmem:[%s1569_s0 + $0x10] sm:$0xff]  ;;  %v164_v47 = vrot.slane %v1309_v36, 1  ;;  %v154_v50 = vrot.slane %v1319_v38, 7  ;;  %v1171_v52 = vld [vmem:[%s1568_s1] sm:$0xff]  }
   0xb   :  { %v149_v43 = vpack.c.bf16 %v1314_v37, %v1309_v36  ;;  %v152_v45 = vrot.slane %v1314_v37, 7  ;;  %v165_v48 = vrot.slane %v1314_v37, 1  ;;  %v166_v49 = vrot.slane %v1333_v46, 1  ;;  %s1202_s0 = smov 8  }
   0xc   :  { %1031 = vmatpush3.bf16.msra.mxu0 %v1156_v11  ;;  %1107 = vmatpush3.bf16.msra.mxu1 %v1155_v9  ;;  %v167_v51 = vrot.slane %v1319_v38, 1  ;;  %v1347_v55 = vpack.c.bf16 %v929_v41, %v1201_v39  ;;  %v153_v56 = vrot.slane %v1333_v46, 7  ;;  %v159_v59 = vsel %vm155_vm5, %v154_v50, %v151_v44 }
   0xd   :  { %1032 = vmatprep.subr.bf16.mxu0 %v1157_v12  ;;  %1108 = vmatprep.subr.bf16.mxu1 %v1158_v13  ;;  %v158_v54 = vsel %vm155_vm5, %v151_v44, %v152_v45  ;;  %v170_v57 = vsel %vm168_vm4, %v165_v48, %v166_v49  ;;  %v171_v58 = vsel %vm168_vm4, %v164_v47, %v165_v48 }
   0xe   :  { %353 = vmatprep.mubr.bf16.mxu0 %v149_v43  ;;  %v173_v60 = vpack.c.bf16 %v170_v57, %v171_v58  ;;  %v160_v61 = vpack.c.bf16 %v158_v54, %v159_v59  ;;  %v169_v62 = vsel %vm168_vm4, %v166_v49, %v167_v51  ;;  %v172_v63 = vsel %vm168_vm4, %v167_v51, %v164_v47 }
   0xf   :  { %v174_v2 = vpack.c.bf16 %v172_v63, %v169_v62  ;;  %v150_v3 = vpack.c.bf16 %v1319_v38, %v1333_v46  ;;  %v156_v4 = vsel %vm155_vm5, %v153_v56, %v154_v50  ;;  %v157_v6 = vsel %vm155_vm5, %v152_v45, %v153_v56 }
  0x10   :  { %1033 = vmatpush3.bf16.msra.mxu0 %v1159_v14  ;;  %1109 = vmatpush3.bf16.msra.mxu1 %v1158_v13  ;;  %v175_v0 = vmul.bf16 %v173_v60, %v1321_v40  ;;  %v162_v1 = vmul.bf16 %v160_v61, %v1343_v53  ;;  %v1369_v8 = vpack.c.bf16 %v1201_v39, %v927_v42 }
  0x11   :  { %1034 = vmatprep.subr.bf16.mxu0 %v1160_v16  ;;  %1110 = vmatprep.subr.bf16.mxu1 %v1161_v18  ;;  %v176_v7 = vmul.bf16 %v174_v2, %v1347_v55  ;;  %v161_v9 = vpack.c.bf16 %v156_v4, %v157_v6 }
  0x12   :  { %1118 = vmatprep.mubr.bf16.mxu1 %v175_v0 }
  0x13   :  { %v163_v10 = vmul.bf16 %v161_v9, %v1369_v8  ;;  %v1173_v9 = vld [vmem:[%s1568_s1 + $0xf8] sm:$0xff]  }
  0x14   :  { %1035 = vmatpush3.bf16.msra.mxu0 %v1162_v21  ;;  %1111 = vmatpush3.bf16.msra.mxu1 %v1161_v18 }
  0x15   :  { %1036 = vmatprep.subr.bf16.mxu0 %v1163_v22  ;;  %1112 = vmatprep.subr.bf16.mxu1 %v1164_v24 }
  0x18   :  { %1037 = vmatpush3.bf16.msra.mxu0 %v1165_v28  ;;  %1113 = vmatpush3.bf16.msra.mxu1 %v1164_v24 }
  0x19   :  { %1038 = vmatprep.subr.bf16.mxu0 %v1166_v29  ;;  %1114 = vmatprep.subr.bf16.mxu1 %v1167_v31 }
  0x1c   :  { %1039 = vmatpush3.bf16.msra.mxu0 %v1168_v32  ;;  %1115 = vmatpush3.bf16.msra.mxu1 %v1167_v31 }
  0x1d   :  { %1040 = vmatprep.subr.bf16.mxu0 %v1169_v33  ;;  %1116 = vmatprep.subr.bf16.mxu1 %v1170_v34 }
  0x20   :  { %1041 = vmatpush3.bf16.msra.mxu0 %v1171_v52  ;;  %1117 = vmatpush3.bf16.msra.mxu1 %v1170_v34 }
  0x23   :  { %354 = vmatmul.mubr.bf16.vlgmr.msra.gmra.mxu0 %v162_v1  ;;  %1119 = vmatmul.mubr.bf16.vlgmr.msra.gmra.mxu1 %v176_v7  ;;  %v1172_v7 = vld [vmem:[%s1568_s1 + $0x138] sm:$0xff]  }
  0x24   :  { %361 = vmatprep.mubr.bf16.mxu0 %v150_v3  ;;  %1064 = vmatprep.subr.bf16.mxu0 %v1172_v7 }
  0x25   :  { %1065 = vmatpush3.bf16.msra.mxu0 %v1173_v9 }
  0x2b   :  { %362 = vmatmul.mubr.bf16.gmra.mxu0 %v163_v10  ;;  %v1174_v10 = vld [vmem:[%s1568_s1 + $0x178] sm:$0xff]  }
  0x2c   :  { %1122 = vmatprep.subr.bf16.mxu1 %v1174_v10 }
  0x2d   :  { %1123 = vmatpush3.bf16.msra.mxu1 %v1174_v10 }
  0xe3   :  { %v1042_v11 = vpop.f32.mrf.mxu0  ;;  %v1120_v12 = vpop.f32.mrf.mxu1 }
  0xe5   :  { %v1043_v13 = vpop.f32.mrf.mxu0  ;;  %v404_v14 = vpop.f32.mrf.mxu1 }
  0xe6   :  { %v1044_v18 = vadd.f32 %v1043_v13, %v1042_v11  ;;  %v1175_v13 = vld [vmem:[%s1568_s1 + $0x130] sm:$0xff]  }
  0xe7   :  { %v1045_v15 = vpop.f32.mrf.mxu0  ;;  %v1121_v16 = vpop.f32.mrf.mxu1  ;;  %1066 = vmatprep.subr.bf16.mxu0 %v1175_v13 }
  0xe8   :  { %v1374_v24 = vadd.f32 %v1044_v18, %v404_v14  ;;  %v1176_v14 = vld [vmem:[%s1568_s1 + $0xf0] sm:$0xff]   ;;  %v1180_v18 = vld [vmem:[%s1568_s1 + $0x168] sm:$0xff]  }
  0xe9   :  { %v1046_v17 = vpop.f32.mrf.mxu0  ;;  %v407_v20 = vpop.f32.mrf.mxu1  ;;  %1067 = vmatpush3.bf16.msra.mxu0 %v1176_v14 }
  0xea   :  { %v1047_v19 = vadd.f32 %v1046_v17, %v1045_v15  ;;  %v428_v30 = vmul.f32 %v1374_v24, %v1374_v24  ;;  %v1177_v15 = vld [vmem:[%s1568_s1 + $0x170] sm:$0xff]   ;;  %v1179_v17 = vld [vmem:[%s1568_s1 + $0xe8] sm:$0xff]  }
  0xeb   :  { %v1048_v21 = vpop.f32.mrf.mxu0  ;;  %1124 = vmatprep.subr.bf16.mxu1 %v1177_v15 }
  0xec   :  { %v1372_v22 = vadd.f32 %v1047_v19, %v407_v20  ;;  %1125 = vmatpush3.bf16.msra.mxu1 %v1177_v15  ;;  %v1181_v19 = vld [vmem:[%s1568_s1 + $0x120] sm:$0xff]  }
  0xed   :  { %v1049_v23 = vpop.f32.mrf.mxu0  ;;  %1126 = vmatprep.subr.bf16.mxu1 %v1180_v18  ;;  %v1182_v20 = vld [vmem:[%s1568_s1 + $0xe0] sm:$0xff]  }
  0xee   :  { %v1050_v25 = vadd.f32 %v1049_v23, %v1048_v21  ;;  %v429_v27 = vmul.f32 %v1372_v22, %v1372_v22  ;;  %v419_v31 = vadd.f32 %v1372_v22, %v1374_v24  ;;  %v1183_v21 = vld [vmem:[%s1568_s1 + $0x160] sm:$0xff]   ;;  %v1184_v23 = vld [vmem:[%s1568_s1 + $0x118] sm:$0xff]  }
  0xef   :  { %v1051_v26 = vpop.f32.mrf.mxu0 }
  0xf0   :  { %v1378_v28 = vadd.f32 %v1120_v12, %v1050_v25  ;;  %v432_v34 = vadd.f32 %v429_v27, %v428_v30  ;;  %1127 = vmatpush3.bf16.msra.mxu1 %v1180_v18  ;;  %v1185_v25 = vld [vmem:[%s1568_s1 + $0xd8] sm:$0xff]   ;;  %v1187_v27 = vld [vmem:[%s1568_s1 + $0x110] sm:$0xff]  }
  0xf1   :  { %v1052_v29 = vpop.f32.mrf.mxu0  ;;  %1128 = vmatprep.subr.bf16.mxu1 %v1183_v21  ;;  %v1189_v30 = vld [vmem:[%s1568_s1 + $0x150] sm:$0xff]  }
  0xf2   :  { %v430_v32 = vmul.f32 %v1378_v28, %v1378_v28  ;;  %v1053_v33 = vadd.f32 %v1052_v29, %v1051_v26  ;;  %v420_v35 = vadd.f32 %v419_v31, %v1378_v28  ;;  %v1186_v26 = vld [vmem:[%s1568_s1 + $0x158] sm:$0xff]   ;;  %v1188_v29 = vld [vmem:[%s1568_s1 + $0xd0] sm:$0xff]   ;;  %v1190_v31 = vld [vmem:[%s1568_s1 + $0x108] sm:$0xff]  }
  0xf4   :  { %v1387_v39 = vadd.f32 %v1121_v16, %v1053_v33  ;;  %v433_v41 = vadd.f32 %v432_v34, %v430_v32  ;;  %v1178_v16 = vld [vmem:[%s1568_s1 + $0x128] sm:$0xff]   ;;  %1129 = vmatpush3.bf16.msra.mxu1 %v1183_v21  ;;  %v1193_v34 = vld [vmem:[%s1568_s1 + $0x100] sm:$0xff]  }
  0xf5   :  { %1068 = vmatprep.subr.bf16.mxu0 %v1178_v16  ;;  %1130 = vmatprep.subr.bf16.mxu1 %v1186_v26  ;;  %v1192_v32 = vld [vmem:[%s1568_s1 + $0x148] sm:$0xff]  }
  0xf6   :  { %v421_v42 = vadd.f32 %v420_v35, %v1387_v39  ;;  %v431_v43 = vmul.f32 %v1387_v39, %v1387_v39  ;;  %1069 = vmatpush3.bf16.msra.mxu0 %v1179_v17  ;;  %v1191_v33 = vld [vmem:[%s1568_s1 + $0xc8] sm:$0xff]   ;;  %v1194_v35 = vld [vmem:[%s1568_s1 + $0xc0] sm:$0xff]  }
  0xf7   :  { %1070 = vmatprep.subr.bf16.mxu0 %v1181_v19 }
  0xf8   :  { %v434_v44 = vadd.f32 %v433_v41, %v431_v43  ;;  %v422_v45 = vrot.slane %v421_v42, 4  ;;  %1131 = vmatpush3.bf16.msra.mxu1 %v1186_v26  ;;  %v1195_v41 = vld [vmem:[%s1568_s1 + $0x140] sm:$0xff]  }
  0xf9   :  { %1132 = vmatprep.subr.bf16.mxu1 %v1189_v30 }
  0xfa   :  { %v423_v47 = vadd.f32 %v422_v45, %v421_v42  ;;  %v435_v48 = vrot.slane %v434_v44, 4  ;;  %1071 = vmatpush3.bf16.msra.mxu0 %v1182_v20 }
  0xfb   :  { %1072 = vmatprep.subr.bf16.mxu0 %v1184_v23 }
  0xfc   :  { %v424_v49 = vrot.slane %v423_v47, 2  ;;  %v436_v50 = vadd.f32 %v435_v48, %v434_v44  ;;  %1133 = vmatpush3.bf16.msra.mxu1 %v1189_v30 }
  0xfd   :  { %1134 = vmatprep.subr.bf16.mxu1 %v1192_v32 }
  0xfe   :  { %v425_v51 = vadd.f32 %v424_v49, %v423_v47  ;;  %v437_v52 = vrot.slane %v436_v50, 2  ;;  %1073 = vmatpush3.bf16.msra.mxu0 %v1185_v25 }
  0xff   :  { %1074 = vmatprep.subr.bf16.mxu0 %v1187_v27 }
 0x100   :  { %v426_v54 = vrot.slane %v425_v51, 1  ;;  %v438_v56 = vadd.f32 %v437_v52, %v436_v50  ;;  %1135 = vmatpush3.bf16.msra.mxu1 %v1192_v32 }
 0x101   :  { %1136 = vmatprep.subr.bf16.mxu1 %v1195_v41 }
 0x102   :  { %v427_v57 = vadd.f32 %v426_v54, %v425_v51  ;;  %v439_v58 = vrot.slane %v438_v56, 1  ;;  %1075 = vmatpush3.bf16.msra.mxu0 %v1188_v29  ;;  %v1477_v54 = vsub.s32 0, %v1238_v5 }
 0x103   :  { %1076 = vmatprep.subr.bf16.mxu0 %v1190_v31 }
 0x104   :  { %441 = vrot.lane.b32.xlu0 %v427_v57, %s1202_s0  ;;  %v440_v59 = vadd.f32 %v439_v58, %v438_v56  ;;  %1137 = vmatpush3.bf16.msra.mxu1 %v1195_v41  ;;  %v498_v58 = vsub.s32 1, %v1238_v5 }
 0x106   :  { %1077 = vmatpush3.bf16.msra.mxu0 %v1191_v33 }
 0x107   :  { %1078 = vmatprep.subr.bf16.mxu0 %v1193_v34 }
 0x108   :  { %444 = vrot.lane.b32.xlu0 %v440_v59, %s1202_s0 }
 0x10a   :  { %1079 = vmatpush3.bf16.msra.mxu0 %v1194_v35 }
 0x176   :  { %v442_v60 = vpop.permute.xlu0 %441 }
 0x177   :  { %v443_v61 = vadd.f32 %v442_v60, %v427_v57  ;;  %v1483_v57 = vld [vmem:[%s1570_s2] sm:$0xff] }
 0x179   :  { %447 = vrot.lane.b32.xlu1 %v443_v61, %s1203_s14 }
 0x17a   :  { %v445_v62 = vpop.permute.xlu0 %444 }
 0x17b   :  { %v446_v63 = vadd.f32 %v445_v62, %v440_v59 }
 0x17d   :  { %450 = vrot.lane.b32.xlu1 %v446_v63, %s1203_s14 }
 0x1eb   :  { %v448_v0 = vpop.permute.xlu1 %447 }
 0x1ec   :  { %v449_v1 = vadd.f32 %v448_v0, %v443_v61  ;;  %v491_v61 = vrot.slane %v1483_v57, %v1477_v54 }
 0x1ee   :  { %453 = vrot.lane.b32.xlu0 %v449_v1, %s1204_s15 }
 0x1ef   :  { %v451_v2 = vpop.permute.xlu1 %450 }
 0x1f0   :  { %v452_v3 = vadd.f32 %v451_v2, %v446_v63  ;;  %v499_v2 = vrot.slane %v1483_v57, %v498_v58 }
 0x1f2   :  { %456 = vrot.lane.b32.xlu1 %v452_v3, %s1204_s15 }
 0x260   :  { %v454_v4 = vpop.permute.xlu0 %453 }
 0x261   :  { %v1398_v6 = vadd.f32 %v454_v4, %v449_v1 }
 0x263   :  { %459 = vrot.lane.b32.xlu0 %v1398_v6, %s1205_s18 }
 0x264   :  { %v457_v11 = vpop.permute.xlu1 %456 }
 0x265   :  { %v458_v12 = vadd.f32 %v457_v11, %v452_v3 }
 0x267   :  { %462 = vrot.lane.b32.xlu1 %v458_v12, %s1205_s18 }
 0x2d5   :  { %v460_v42 = vpop.permute.xlu0 %459 }
 0x2d6   :  { %v461_v43 = vadd.f32 %v460_v42, %v1398_v6 }
 0x2d8   :  { %v465_v44 = vmul.f32 0.001953125, %v461_v43 }
 0x2d9   :  { %v463_v45 = vpop.permute.xlu1 %462 }
 0x2da   :  { %v464_v47 = vadd.f32 %v463_v45, %v458_v12  ;;  %v467_v48 = vmul.f32 %v465_v44, %v465_v44  ;;  %v473_v56 = vrot.slane %v465_v44, %v1477_v54 }
 0x2dc   :  { %v466_v49 = vmul.f32 0.001953125, %v464_v47  ;;  %v474_v60 = vsub.f32 %v1374_v24, %v473_v56  ;;  %v475_v62 = vsub.f32 %v1372_v22, %v473_v56  ;;  %v476_v63 = vsub.f32 %v1378_v28, %v473_v56 }
 0x2dd   :  { %v477_v0 = vsub.f32 %v1387_v39, %v473_v56 }
 0x2de   :  { %v468_v50 = vsub.f32 %v466_v49, %v467_v48 }
 0x2e0   :  { %v469_v51 = vmax.f32 %v468_v50, 0.0 }
 0x2e2   :  { %v478_v52 = vadd.f32 1e-05, %v469_v51 }
 0x2e4   :  { %1196 = vrsqrt.f32 %v478_v52 }
 0x2f1   :  { %v1197_v59 = vpop.eup %1196 }
 0x2f2   :  { %v483_v1 = vrot.slane %v1197_v59, %v1477_v54 }
 0x2f4   :  { %v487_v3 = vmul.f32 %v483_v1, %v477_v0  ;;  %v484_v4 = vmul.f32 %v483_v1, %v474_v60  ;;  %v485_v6 = vmul.f32 %v483_v1, %v475_v62  ;;  %v486_v7 = vmul.f32 %v483_v1, %v476_v63 }
 0x2f6   :  { %v492_v9 = vmul.f32 %v491_v61, %v484_v4  ;;  %v493_v10 = vmul.f32 %v491_v61, %v485_v6  ;;  %v495_v24 = vmul.f32 %v491_v61, %v487_v3  ;;  %v494_v11 = vmul.f32 %v491_v61, %v486_v7 }
 0x2f8   :  { %v500_v12 = vadd.f32 %v499_v2, %v492_v9  ;;  %v501_v13 = vadd.f32 %v499_v2, %v493_v10  ;;  %v503_v14 = vadd.f32 %v499_v2, %v495_v24  ;;  %v502_v22 = vadd.f32 %v499_v2, %v494_v11 }
 0x2fa   :  { %v504_v15 = vmax.f32 %v500_v12, 0.0  ;;  %v505_v28 = vmax.f32 %v501_v13, 0.0  ;;  %v507_v16 = vmax.f32 %v503_v14, 0.0  ;;  %v506_v39 = vmax.f32 %v502_v22, 0.0 }
 0x2fc   :  { %v557_v17 = vpack.c.bf16 %v505_v28, %v504_v15  ;;  %v559_v18 = vrot.slane %v504_v15, 7  ;;  %v560_v19 = vrot.slane %v505_v28, 7  ;;  %v562_v20 = vrot.slane %v507_v16, 7 }
 0x2fd   :  { %v571_v21 = vrot.slane %v504_v15, 1  ;;  %v572_v23 = vrot.slane %v505_v28, 1  ;;  %v573_v25 = vrot.slane %v506_v39, 1  ;;  %v574_v29 = vrot.slane %v507_v16, 1 }
 0x2fe   :  { %759 = vmatprep.mubr.bf16.mxu0 %v557_v17  ;;  %v565_v26 = vsel %vm155_vm5, %v559_v18, %v560_v19  ;;  %v566_v27 = vsel %vm155_vm5, %v562_v20, %v559_v18  ;;  %v561_v30 = vrot.slane %v506_v39, 7  ;;  %v558_v45 = vpack.c.bf16 %v507_v16, %v506_v39 }
 0x2ff   :  { %v567_v31 = vpack.c.bf16 %v565_v26, %v566_v27  ;;  %v576_v32 = vsel %vm168_vm4, %v572_v23, %v573_v25  ;;  %v577_v33 = vsel %vm168_vm4, %v571_v21, %v572_v23  ;;  %v575_v35 = vsel %vm168_vm4, %v573_v25, %v574_v29 }
 0x300   :  { %v579_v34 = vpack.c.bf16 %v576_v32, %v577_v33  ;;  %v578_v41 = vsel %vm168_vm4, %v574_v29, %v571_v21  ;;  %v563_v47 = vsel %vm155_vm5, %v561_v30, %v562_v20  ;;  %v564_v48 = vsel %vm155_vm5, %v560_v19, %v561_v30 }
 0x301   :  { %v569_v42 = vmul.bf16 %v567_v31, %v1343_v53  ;;  %v580_v43 = vpack.c.bf16 %v578_v41, %v575_v35  ;;  %v568_v50 = vpack.c.bf16 %v563_v47, %v564_v48 }
 0x302   :  { %v581_v44 = vmul.bf16 %v579_v34, %v1321_v40 }
 0x303   :  { %760 = vmatmul.mubr.bf16.vlgmr.msra.gmra.mxu0 %v569_v42  ;;  %v582_v49 = vmul.bf16 %v580_v43, %v1347_v55  ;;  %v570_v51 = vmul.bf16 %v568_v50, %v1369_v8 }
 0x304   :  { %1138 = vmatprep.mubr.bf16.mxu1 %v581_v44  ;;  %767 = vmatprep.mubr.bf16.mxu0 %v558_v45 }
 0x305   :  { %1139 = vmatmul.mubr.bf16.vlgmr.msra.gmra.mxu1 %v582_v49 }
 0x30b   :  { %768 = vmatmul.mubr.bf16.gmra.mxu0 %v570_v51 }
 0x3c3   :  { %v1080_v53 = vpop.f32.mrf.mxu0 }
 0x3c5   :  { %v1140_v52 = vpop.f32.mrf.mxu1  ;;  %v1081_v40 = vpop.f32.mrf.mxu0 }
 0x3c6   :  { %v1082_v61 = vadd.f32 %v1081_v40, %v1080_v53 }
 0x3c7   :  { %v810_v56 = vpop.f32.mrf.mxu1  ;;  %v1083_v58 = vpop.f32.mrf.mxu0 }
 0x3c8   :  { %v1516_v2 = vadd.f32 %v1082_v61, %v810_v56  ;;  %v896_v61 = vsub.s32 2, %v1238_v5 }
 0x3c9   :  { %v1141_v59 = vpop.f32.mrf.mxu1  ;;  %v1084_v60 = vpop.f32.mrf.mxu0 }
 0x3ca   :  { %v1085_v62 = vadd.f32 %v1084_v60, %v1083_v58  ;;  %v834_v9 = vmul.f32 %v1516_v2, %v1516_v2 }
 0x3cb   :  { %v813_v63 = vpop.f32.mrf.mxu1  ;;  %v1086_v0 = vpop.f32.mrf.mxu0 }
 0x3cc   :  { %v1514_v1 = vadd.f32 %v1085_v62, %v813_v63  ;;  %v904_v63 = vsub.s32 3, %v1238_v5 }
 0x3cd   :  { %v1087_v55 = vpop.f32.mrf.mxu0 }
 0x3ce   :  { %v1088_v3 = vadd.f32 %v1087_v55, %v1086_v0  ;;  %v835_v8 = vmul.f32 %v1514_v1, %v1514_v1  ;;  %v825_v10 = vadd.f32 %v1514_v1, %v1516_v2  ;;  %v897_v55 = vrot.slane %v1483_v57, %v896_v61 }
 0x3cf   :  { %v1089_v4 = vpop.f32.mrf.mxu0 }
 0x3d0   :  { %v1520_v6 = vadd.f32 %v1140_v52, %v1088_v3  ;;  %v838_v12 = vadd.f32 %v835_v8, %v834_v9 }
 0x3d1   :  { %v1090_v7 = vpop.f32.mrf.mxu0 }
 0x3d2   :  { %v836_v24 = vmul.f32 %v1520_v6, %v1520_v6  ;;  %v1091_v11 = vadd.f32 %v1090_v7, %v1089_v4  ;;  %v826_v13 = vadd.f32 %v825_v10, %v1520_v6  ;;  %v905_v10 = vrot.slane %v1483_v57, %v904_v63 }
 0x3d4   :  { %v1529_v14 = vadd.f32 %v1141_v59, %v1091_v11  ;;  %v839_v22 = vadd.f32 %v838_v12, %v836_v24 }
 0x3d6   :  { %v827_v15 = vadd.f32 %v826_v13, %v1529_v14  ;;  %v837_v28 = vmul.f32 %v1529_v14, %v1529_v14 }
 0x3d8   :  { %v828_v16 = vrot.slane %v827_v15, 4  ;;  %v840_v39 = vadd.f32 %v839_v22, %v837_v28 }
 0x3da   :  { %v829_v17 = vadd.f32 %v828_v16, %v827_v15  ;;  %v841_v18 = vrot.slane %v840_v39, 4 }
 0x3dc   :  { %v830_v19 = vrot.slane %v829_v17, 2  ;;  %v842_v20 = vadd.f32 %v841_v18, %v840_v39 }
 0x3de   :  { %v831_v21 = vadd.f32 %v830_v19, %v829_v17  ;;  %v843_v23 = vrot.slane %v842_v20, 2 }
 0x3e0   :  { %v832_v25 = vrot.slane %v831_v21, 1  ;;  %v844_v26 = vadd.f32 %v843_v23, %v842_v20 }
 0x3e2   :  { %v833_v27 = vadd.f32 %v832_v25, %v831_v21  ;;  %v845_v29 = vrot.slane %v844_v26, 1 }
 0x3e4   :  { %847 = vrot.lane.b32.xlu0 %v833_v27, %s1202_s0  ;;  %v846_v30 = vadd.f32 %v845_v29, %v844_v26 }
 0x3e6   :  { %850 = vrot.lane.b32.xlu1 %v846_v30, %s1202_s0 }
 0x456   :  { %v848_v31 = vpop.permute.xlu0 %847 }
 0x457   :  { %v849_v32 = vadd.f32 %v848_v31, %v833_v27 }
 0x458   :  { %v851_v33 = vpop.permute.xlu1 %850 }
 0x459   :  { %v852_v34 = vadd.f32 %v851_v33, %v846_v30  ;;  %853 = vrot.lane.b32.xlu0 %v849_v32, %s1203_s14 }
 0x45b   :  { %856 = vrot.lane.b32.xlu1 %v852_v34, %s1203_s14 }
 0x4cb   :  { %v854_v35 = vpop.permute.xlu0 %853 }
 0x4cc   :  { %v855_v41 = vadd.f32 %v854_v35, %v849_v32 }
 0x4cd   :  { %v857_v42 = vpop.permute.xlu1 %856 }
 0x4ce   :  { %v858_v43 = vadd.f32 %v857_v42, %v852_v34  ;;  %859 = vrot.lane.b32.xlu0 %v855_v41, %s1204_s15 }
 0x4d0   :  { %862 = vrot.lane.b32.xlu1 %v858_v43, %s1204_s15 }
 0x540   :  { %v860_v44 = vpop.permute.xlu0 %859 }
 0x541   :  { %v861_v45 = vadd.f32 %v860_v44, %v855_v41 }
 0x542   :  { %v863_v47 = vpop.permute.xlu1 %862 }
 0x543   :  { %v864_v48 = vadd.f32 %v863_v47, %v858_v43  ;;  %865 = vrot.lane.b32.xlu0 %v861_v45, %s1205_s18 }
 0x545   :  { %868 = vrot.lane.b32.xlu1 %v864_v48, %s1205_s18 }
 0x5b5   :  { %v866_v49 = vpop.permute.xlu0 %865 }
 0x5b6   :  { %v867_v50 = vadd.f32 %v866_v49, %v861_v45 }
 0x5b7   :  { %v869_v51 = vpop.permute.xlu1 %868 }
 0x5b8   :  { %v871_v53 = vmul.f32 0.001953125, %v867_v50  ;;  %v870_v52 = vadd.f32 %v869_v51, %v864_v48 }
 0x5ba   :  { %v873_v40 = vmul.f32 %v871_v53, %v871_v53  ;;  %v872_v56 = vmul.f32 0.001953125, %v870_v52  ;;  %v879_v62 = vrot.slane %v871_v53, %v1477_v54 }
 0x5bc   :  { %v874_v58 = vsub.f32 %v872_v56, %v873_v40  ;;  %v880_v3 = vsub.f32 %v1516_v2, %v879_v62  ;;  %v881_v4 = vsub.f32 %v1514_v1, %v879_v62  ;;  %v882_v8 = vsub.f32 %v1520_v6, %v879_v62 }
 0x5bd   :  { %v883_v7 = vsub.f32 %v1529_v14, %v879_v62 }
 0x5be   :  { %v875_v59 = vmax.f32 %v874_v58, 0.0 }
 0x5c0   :  { %v884_v60 = vadd.f32 1e-05, %v875_v59 }
 0x5c2   :  { %1198 = vrsqrt.f32 %v884_v60 }
 0x5cf   :  { %v1199_v0 = vpop.eup %1198 }
 0x5d0   :  { %v889_v9 = vrot.slane %v1199_v0, %v1477_v54 }
 0x5d2   :  { %v890_v24 = vmul.f32 %v889_v9, %v880_v3  ;;  %v891_v11 = vmul.f32 %v889_v9, %v881_v4  ;;  %v892_v12 = vmul.f32 %v889_v9, %v882_v8  ;;  %v893_v13 = vmul.f32 %v889_v9, %v883_v7 }
 0x5d4   :  { %v898_v5 = vmul.f32 %v897_v55, %v890_v24  ;;  %v899_v22 = vmul.f32 %v897_v55, %v891_v11  ;;  %v900_v15 = vmul.f32 %v897_v55, %v892_v12  ;;  %v901_v28 = vmul.f32 %v897_v55, %v893_v13 }
 0x5d6   :  { %v906_v16 = vadd.f32 %v905_v10, %v898_v5  ;;  %v907_v2 = vadd.f32 %v905_v10, %v899_v22  ;;  %v908_v39 = vadd.f32 %v905_v10, %v900_v15  ;;  %v909_v1 = vadd.f32 %v905_v10, %v901_v28 }
 0x5d8   :  { %v910_v6 = vadd.f32 %v906_v16, %v1309_v36  ;;  %v911_v14 = vadd.f32 %v907_v2, %v1314_v37  ;;  %v912_v54 = vadd.f32 %v908_v39, %v1333_v46  ;;  %v913_v57 = vadd.f32 %v909_v1, %v1319_v38 }
 0x5da   :  { %v914_v17 = vmax.f32 %v910_v6, 0.0  ;;  %v915_v18 = vmax.f32 %v911_v14, 0.0  ;;  %v916_v19 = vmax.f32 %v912_v54, 0.0  ;;  %v917_v20 = vmax.f32 %v913_v57, 0.0 }
 0x5dc   :  { %918 = vst [vmem:[%s1571_s3] sm:$0xff] %v914_v17  ;;  %919 = vst [vmem:[%s1571_s3 + $0x8] sm:$0xff] %v915_v18 }
 0x5dd   :  { %920 = vst [vmem:[%s1571_s3 + $0x10] sm:$0xff] %v916_v19  ;;  %921 = vst [vmem:[%s1571_s3 + $0x18] sm:$0xff] %v917_v20 }

</bundles_post_ra>
